<compile_context>
chip_gen: v7x
topology: tpu7x:2x2x1
jax: 0.10.0
libtpu: 0.0.40
codegen_flags: <defaults>
</compile_context>

<pallas_src>
from functools import partial

import numpy as np
import jax
import jax.numpy as jnp
from jax.experimental import pallas as pl
from jax.experimental.pallas import tpu as pltpu


# ---------------------------------------------------------------------------
# Filterbank construction (deterministic, numpy) — mirrors paderbox get_fbanks
# ---------------------------------------------------------------------------
def _hz2mel(f):
    return 2595.0 * np.log10(1.0 + f / 700.0)


def _mel2hz(m):
    return 700.0 * (10.0 ** (m / 2595.0) - 1.0)


def get_fbanks(sample_rate, stft_size, number_of_filters,
               lowest_frequency=50.0, highest_frequency=None):
    if highest_frequency is None:
        highest_frequency = sample_rate / 2
    f = _mel2hz(np.linspace(_hz2mel(lowest_frequency),
                            _hz2mel(highest_frequency),
                            number_of_filters + 2))
    k = f * stft_size / sample_rate                      # fractional fft bins
    centers = k[1:-1, None]
    onsets = np.minimum(k[:-2, None], centers - 1)
    offsets = np.maximum(k[2:, None], centers + 1)
    idx = np.arange(stft_size // 2 + 1)[None, :]
    fbanks = np.maximum(
        np.minimum((idx - onsets) / (centers - onsets),
                   (offsets - idx) / (offsets - centers)),
        0.0,
    )
    return fbanks.astype(np.float32)                     # (M, F)


def make_mel_param(sample_rate, stft_size, number_of_filters,
                   lowest_frequency=50.0, highest_frequency=None):
    """Exact (F, M) parameter, like self.fbanks in the PyTorch module."""
    fb = get_fbanks(sample_rate, stft_size, number_of_filters,
                    lowest_frequency, highest_frequency)
    fb = fb / (fb.sum(axis=-1, keepdims=True) + 1e-6)    # normalize per filter
    return jnp.asarray(fb.T, dtype=jnp.float32)          # (F, M)


def _round_up(a, b):
    return ((a + b - 1) // b) * b


# ---------------------------------------------------------------------------
# Pallas kernel: (row_tile, F) @ (F, M), optional fused log(. + eps)
# ---------------------------------------------------------------------------
def _mel_kernel(x_ref, fb_ref, o_ref, *, log, eps):
    y = jnp.dot(x_ref[...], fb_ref[...], preferred_element_type=jnp.float32)
    if log:
        y = jnp.log(y + eps)
    o_ref[...] = y


def mel_transform(x, fbanks, *, log=True, eps=1e-12, row_tile=2048):
    """x: (B, C, T, F) float32; fbanks: (F, M) float32 (exact module param).

    Returns (B, C, T, M) float32.
    """
    B, C, T, F = x.shape
    F_fb, M = fbanks.shape
    assert F == F_fb, (F, F_fb)

    N = B * C * T
    # Pure metadata reshape, no HBM copy; F stays a full-extent block so no
    # zero-padding of x is needed (the contraction dim is never ragged).
    x2d = x.reshape(N, F)

    # Tile sizing: big row tiles amortize per-grid-step overhead and fill the
    # MXU M dim.  Clamp for small inputs, and prefer >= 2 grid steps so the
    # "parallel" row axis can shard across both TensorCores on v7x.  Must stay
    # a multiple of 8 (sublane tiling) — the last block may be ragged; OOB rows
    # read garbage and their output writes are masked off by Pallas.
    row_tile = max(8, _round_up(min(int(row_tile), N), 8))
    if row_tile >= N and N > 8:
        row_tile = max(8, _round_up(pl.cdiv(N, 2), 8))
    grid = (pl.cdiv(N, row_tile),)

    cost = pl.CostEstimate(
        flops=2 * N * F * M,
        transcendentals=N * M if log else 0,
        bytes_accessed=N * F * 4 + F * M * 4 + N * M * 4,
    )

    out = pl.pallas_call(
        partial(_mel_kernel, log=log, eps=float(eps)),
        out_shape=jax.ShapeDtypeStruct((N, M), jnp.float32),
        grid_spec=pltpu.PrefetchScalarGridSpec(
            num_scalar_prefetch=0,
            grid=grid,
            in_specs=[
                # x tile: (row_tile, F); F is the full array dim -> legal block.
                pl.BlockSpec((row_tile, F), lambda i: (i, 0)),
                # fbanks: full-extent block, same index every step -> resident
                # in VMEM across the whole grid.
                pl.BlockSpec((F, M), lambda i: (0, 0)),
            ],
            # Output written directly at its true width M (== full array dim):
            # no padded columns, no post-kernel slice pass.
            out_specs=pl.BlockSpec((row_tile, M), lambda i: (i, 0)),
        ),
        compiler_params=pltpu.CompilerParams(
            dimension_semantics=("parallel",)),   # shards row axis across TCs
        cost_estimate=cost,
    )(x2d, fbanks)

    return out.reshape(B, C, T, M)                # pure metadata reshape


# ---------------------------------------------------------------------------
# TODO(synk): training-time warping_fn path (per-example numpy-random
# filterbanks) and MelTransform.inverse (pinverse) are host-side / not part of
# the eval forward; not translated to Pallas.
# ---------------------------------------------------------------------------
if __name__ == "__main__":
    sample_rate = 16000
    stft_size = 512
    number_of_filters = 40
    eps = 1e-12

    fbanks = make_mel_param(sample_rate, stft_size, number_of_filters)  # (257, 40)

    # shapes consistent with the module's doctest: (B, C, T, F=257)
    B, C, T = 3, 1, 100
    F = stft_size // 2 + 1
    key = jax.random.PRNGKey(0)
    x = jax.random.uniform(key, (B, C, T, F), dtype=jnp.float32)

    # Default row_tile exercises the clamp (N=300 -> 2 grid steps, ragged tail).
    y = mel_transform(x, fbanks, log=True, eps=eps)
    y = jax.block_until_ready(y)

    y_ref = jnp.log(x.reshape(-1, F) @ fbanks + eps).reshape(B, C, T, -1)
    assert y.shape == (B, C, T, number_of_filters), y.shape
    assert jnp.max(jnp.abs(y - y_ref)) < 1e-4

    # linear-output (log=False) kernel variant, with an explicit small tile so
    # a multi-step grid path is also exercised.
    y_lin = mel_transform(x, fbanks, log=False, eps=eps, row_tile=128)
    y_lin = jax.block_until_ready(y_lin)
    y_lin_ref = (x.reshape(-1, F) @ fbanks).reshape(B, C, T, -1)
    assert jnp.max(jnp.abs(y_lin - y_lin_ref)) < 1e-4

    print("KERNEL_OK")
</pallas_src>

<mosaic_0001>
module attributes {stable_mosaic.version = 11 : i64} {
  func.func @_mel_kernel(%arg0: i32, %arg1: memref<152x257xf32, #tpu.memory_space<vmem>>, %arg2: memref<257x40xf32, #tpu.memory_space<vmem>>, %arg3: memref<152x40xf32, #tpu.memory_space<vmem>>) attributes {dimension_semantics = [#tpu.dimension_semantics<parallel>], iteration_bounds = array<i64: 2>, scalar_prefetch = 0 : i64, scratch_operands = 0 : i64, tpu.core_type = #tpu.core_type<tc>, window_params = [{transform_indices = @transform_0, window_bounds = array<i64: 152, 257>}, {pipeline_mode = #tpu.pipeline_mode<synchronous>, transform_indices = @transform_1, window_bounds = array<i64: 257, 40>}, {transform_indices = @transform_2, window_bounds = array<i64: 152, 40>}]} {
    %c0 = arith.constant 0 : index
    %c0_0 = arith.constant 0 : index
    %0 = vector.load %arg1[%c0, %c0_0] : memref<152x257xf32, #tpu.memory_space<vmem>>, vector<152x257xf32>
    %c0_1 = arith.constant 0 : index
    %c0_2 = arith.constant 0 : index
    %1 = vector.load %arg2[%c0_1, %c0_2] : memref<257x40xf32, #tpu.memory_space<vmem>>, vector<257x40xf32>
    %cst = arith.constant dense<0.000000e+00> : vector<152x40xf32>
    %2 = tpu.matmul %0, %1, %cst {dimension_numbers = #tpu.dot_dimension_numbers<[1], [0], [0], [1], [0, 0, 1, 1], [], []>} : vector<152x257xf32>, vector<257x40xf32>, vector<152x40xf32> -> vector<152x40xf32>
    %cst_3 = arith.constant 9.99999996E-13 : f32
    %3 = vector.broadcast %cst_3 : f32 to vector<152x40xf32>
    %4 = arith.addf %2, %3 : vector<152x40xf32>
    %5 = math.log %4 : vector<152x40xf32>
    %c0_4 = arith.constant 0 : index
    %c0_5 = arith.constant 0 : index
    %6 = vector.load %arg3[%c0_4, %c0_5] : memref<152x40xf32, #tpu.memory_space<vmem>>, vector<152x40xf32>
    tpu.vector_store %arg3[%c0_4, %c0_5], %5 {strides = array<i32>} : memref<152x40xf32, #tpu.memory_space<vmem>>, vector<152x40xf32>,
    return
  }
  func.func @transform_0(%arg0: i32) -> (i32, i32) {
    %c0_i32 = arith.constant 0 : i32
    %c0_i32_0 = arith.constant 0 : i32
    return %arg0, %c0_i32 : i32, i32
  }
  func.func @transform_1(%arg0: i32) -> (i32, i32) {
    %c0_i32 = arith.constant 0 : i32
    %c0_i32_0 = arith.constant 0 : i32
    %c0_i32_1 = arith.constant 0 : i32
    return %c0_i32, %c0_i32_0 : i32, i32
  }
  func.func @transform_2(%arg0: i32) -> (i32, i32) {
    %c0_i32 = arith.constant 0 : i32
    %c0_i32_0 = arith.constant 0 : i32
    return %arg0, %c0_i32 : i32, i32
  }
}

</mosaic_0001>

<bundles_post_ra>
// kernel: tpu_custom_call.1
= control target key start
LH: loop header
LB: loop body
LE: loop exit
PB: predicated region body
PF: predicated region fallthrough
CT: control target
= control target key end

     0   :  { %s1006_s9 = smov 0   ;;  %s1341_s0 = inlined_call_operand.vmem [shape: f32[300,257], index: 0, kind: input, shape index: {}]   ;;  %s1342_s1 = inlined_call_operand.vmem [shape: f32[257,40], index: 1, kind: input, shape index: {}]   ;;  %s1343_s2 = inlined_call_operand.vmem [shape: f32[300,40], index: 2, kind: output, shape index: {}]  }
   0x1 LB: > { %s736_s10 = sadd.s32 4294967295, %s986_s9   ;;  %p740_p0 = scmp.ge.s32.totalorder %s986_s9, 1  ;;  %s986_s9 = sphi %s1006_s9, %s12_s9  }
   0x2   : > { %p114_p1 = scmp.lt.s32.totalorder %s986_s9, 3 }
   0x4   : > { %p115_p2 = pnand %p740_p0, %p114_p1 }
   0x5   : > { %v207_v0 = vld [vmem:[%s1342_s1] sm:$0xff] (!%p115_p2)  ;;  %v208_v1 = vld [vmem:[%s1342_s1 + $0x8] sm:$0xff] (!%p115_p2)  ;;  %v209_v2 = vld [vmem:[%s1342_s1 + $0x10] sm:$0xff] (!%p115_p2)  ;;  %s137_s17 = smul.u32 (!%p115_p2), 19, %s736_s10  ;;  %v988_v3 = vmov (!%p115_p2), 0.0|0.0   ;;  %v989_v6 = vmov (!%p115_p2), 0.0  }
   0x6   : > { %118 = sbr.rel (%p115_p2) target bundleno = 373 (0x175), region = 28  ;;  %844 = vmatprep.subr.bf16.mxu1 (!%p115_p2), %v988_v3  ;;  %v845_v4 = vpack.c.bf16 (!%p115_p2), %v208_v1, %v207_v0  ;;  %v210_v5 = vld [vmem:[%s1342_s1 + $0x18] sm:$0xff] (!%p115_p2)  ;;  %785 = vmatprep.subr.mxu0 (!%p115_p2), %v989_v6  ;;  %vm990_vm0 = vmmov (!%p115_p2), 0   ;;  %v211_v8 = vld [vmem:[%s1342_s1 + $0x20] sm:$0xff] (!%p115_p2)  ;;  %v212_v9 = vld [vmem:[%s1342_s1 + $0x28] sm:$0xff] (!%p115_p2)  ;;  %vm298_vm1 = vcmask (!%p115_p2), 1040384  }
   0x7   : > { %p138_p3 = scmp.lt.s32.totalorder (!%p115_p2), %s137_s17, 37  ;;  %787 = vmatprep.mubr.msk.f32.mxu0 (!%p115_p2), %vm990_vm0, %v989_v6  ;;  %v848_v7 = vpack.c.bf16 (!%p115_p2), %v210_v5, %v209_v2  ;;  %v851_v10 = vpack.c.bf16 (!%p115_p2), %v212_v9, %v211_v8  ;;  %v213_v11 = vld [vmem:[%s1342_s1 + $0x30] sm:$0xff] (!%p115_p2)  ;;  %v214_v12 = vld [vmem:[%s1342_s1 + $0x38] sm:$0xff] (!%p115_p2)  ;;  %vm240_vm2 = vcmask (!%p115_p2), 7168   ;;  %v239_v15 = vld [vmem:[%s1342_s1 + $0x100] sm:$0x1] (!%p115_p2) }
   0x8   : > { %846 = vmatpush1.bf16.msra.mxu1 (!%p115_p2), %v845_v4  ;;  %v854_v14 = vpack.c.bf16 (!%p115_p2), %v214_v12, %v213_v11  ;;  %v215_v17 = vld [vmem:[%s1342_s1 + $0x40] sm:$0xff] (!%p115_p2)  ;;  %v216_v18 = vld [vmem:[%s1342_s1 + $0x48] sm:$0xff] (!%p115_p2)  ;;  %786 = vmatpush3.msk.msra.mxu0 (!%p115_p2), %vm298_vm1, %v239_v15  ;;  %v217_v21 = vld [vmem:[%s1342_s1 + $0x50] sm:$0xff] (!%p115_p2)  ;;  %vm660_vm3 = vcmask (!%p115_p2), 326656  }
   0x9   : > { %847 = vmatprep.subr.bf16.mxu1 (!%p115_p2), %v988_v3  ;;  %v857_v20 = vpack.c.bf16 (!%p115_p2), %v216_v18, %v215_v17  ;;  %v218_v22 = vld [vmem:[%s1342_s1 + $0x58] sm:$0xff] (!%p115_p2)  ;;  %v219_v25 = vld [vmem:[%s1342_s1 + $0x60] sm:$0xff] (!%p115_p2)  ;;  %v220_v26 = vld [vmem:[%s1342_s1 + $0x68] sm:$0xff] (!%p115_p2) }
   0xa   : > { %v860_v24 = vpack.c.bf16 (!%p115_p2), %v218_v22, %v217_v21  ;;  %v863_v28 = vpack.c.bf16 (!%p115_p2), %v220_v26, %v219_v25  ;;  %v221_v29 = vld [vmem:[%s1342_s1 + $0x70] sm:$0xff] (!%p115_p2)  ;;  %v222_v30 = vld [vmem:[%s1342_s1 + $0x78] sm:$0xff] (!%p115_p2)  ;;  %v223_v33 = vld [vmem:[%s1342_s1 + $0x80] sm:$0xff] (!%p115_p2) }
   0xb   : > { %v866_v32 = vpack.c.bf16 (!%p115_p2), %v222_v30, %v221_v29  ;;  %v224_v34 = vld [vmem:[%s1342_s1 + $0x88] sm:$0xff] (!%p115_p2)  ;;  %v225_v37 = vld [vmem:[%s1342_s1 + $0x90] sm:$0xff] (!%p115_p2)  ;;  %v226_v38 = vld [vmem:[%s1342_s1 + $0x98] sm:$0xff] (!%p115_p2) }
   0xc   : > { %849 = vmatpush1.bf16.msra.mxu1 (!%p115_p2), %v848_v7  ;;  %v869_v36 = vpack.c.bf16 (!%p115_p2), %v224_v34, %v223_v33  ;;  %v872_v40 = vpack.c.bf16 (!%p115_p2), %v226_v38, %v225_v37  ;;  %v227_v41 = vld [vmem:[%s1342_s1 + $0xa0] sm:$0xff] (!%p115_p2)  ;;  %v228_v42 = vld [vmem:[%s1342_s1 + $0xa8] sm:$0xff] (!%p115_p2)  ;;  %v229_v45 = vld [vmem:[%s1342_s1 + $0xb0] sm:$0xff] (!%p115_p2) }
   0xd   : > { %s1345_s17 = smov (!%p138_p3, %s137_s17), 37  ;;  %850 = vmatprep.subr.bf16.mxu1 %v988_v3  ;;  %v875_v44 = vpack.c.bf16 %v228_v42, %v227_v41  ;;  %v230_v46 = vld [vmem:[%s1342_s1 + $0xb8] sm:$0xff]  ;;  %v231_v49 = vld [vmem:[%s1342_s1 + $0xc0] sm:$0xff]  ;;  %v232_v50 = vld [vmem:[%s1342_s1 + $0xc8] sm:$0xff] }
   0xe   : > { %s930_s24 = smul.u32 24, %s1345_s17  ;;  %v878_v48 = vpack.c.bf16 %v230_v46, %v229_v45  ;;  %v881_v52 = vpack.c.bf16 %v232_v50, %v231_v49  ;;  %v233_v53 = vld [vmem:[%s1342_s1 + $0xd0] sm:$0xff]  ;;  %v234_v54 = vld [vmem:[%s1342_s1 + $0xd8] sm:$0xff]  ;;  %v235_v57 = vld [vmem:[%s1342_s1 + $0xe0] sm:$0xff] }
   0xf   : > { %v884_v56 = vpack.c.bf16 %v234_v54, %v233_v53  ;;  %v236_v58 = vld [vmem:[%s1342_s1 + $0xe8] sm:$0xff]  ;;  %v237_v61 = vld [vmem:[%s1342_s1 + $0xf0] sm:$0xff]  ;;  %v238_v62 = vld [vmem:[%s1342_s1 + $0xf8] sm:$0xff] }
  0x10   : > { %s1050_s3 = scalar_lea.vmem %s1341_s0, %s930_s24  ;;  %852 = vmatpush1.bf16.msra.mxu1 %v851_v10  ;;  %v887_v60 = vpack.c.bf16 %v236_v58, %v235_v57  ;;  %v890_v0 = vpack.c.bf16 %v238_v62, %v237_v61 }
  0x11   : > { %v151_v13 = vld [vmem:[%s1050_s3 + $0x8] sm:$0xff]  ;;  %v152_v16 = vld [vmem:[%s1050_s3 + $0x10] sm:$0xff]  ;;  %853 = vmatprep.subr.bf16.mxu1 %v988_v3  ;;  %v158_v23 = vld [vmem:[%s1050_s3 + $0x40] sm:$0xff] }
  0x12   : > { %366 = vmatprep.mubr.f32.mxu1 %v151_v13  ;;  %788 = vmatmul.mubr.msk.f32.vlgmr.msra.gmra.mrb[0].mxu0 %vm240_vm2, %v152_v16  ;;  %v155_v19 = vld [vmem:[%s1050_s3 + $0x28] sm:$0xff]  ;;  %v161_v27 = vld [vmem:[%s1050_s3 + $0x58] sm:$0xff]  ;;  %v164_v31 = vld [vmem:[%s1050_s3 + $0x70] sm:$0xff] }
  0x13   : > { %790 = vmatprep.mubr.msk.f32.mxu0 %vm990_vm0, %v989_v6  ;;  %v167_v35 = vld [vmem:[%s1050_s3 + $0x88] sm:$0xff]  ;;  %v170_v39 = vld [vmem:[%s1050_s3 + $0xa0] sm:$0xff]  ;;  %v173_v43 = vld [vmem:[%s1050_s3 + $0xb8] sm:$0xff] }
  0x14   : > { %855 = vmatpush1.bf16.msra.mxu1 %v854_v14  ;;  %v176_v47 = vld [vmem:[%s1050_s3 + $0xd0] sm:$0xff]  ;;  %v179_v51 = vld [vmem:[%s1050_s3 + $0xe8] sm:$0xff]  ;;  %v182_v55 = vld [vmem:[%s1050_s3 + $0x100] sm:$0xff] }
  0x15   : > { %856 = vmatprep.subr.bf16.mxu1 %v988_v3  ;;  %v185_v59 = vld [vmem:[%s1050_s3 + $0x118] sm:$0xff]  ;;  %v188_v63 = vld [vmem:[%s1050_s3 + $0x130] sm:$0xff]  ;;  %v191_v1 = vld [vmem:[%s1050_s3 + $0x148] sm:$0xff] }
  0x16   : > { %791 = vmatmul.mubr.msk.f32.gmra.mrb[2].mxu0 %vm240_vm2, %v155_v19  ;;  %v150_v2 = vld [vmem:[%s1050_s3] sm:$0xff]  ;;  %v153_v5 = vld [vmem:[%s1050_s3 + $0x18] sm:$0xff]  ;;  %v156_v9 = vld [vmem:[%s1050_s3 + $0x30] sm:$0xff] }
  0x17   : > { %793 = vmatprep.mubr.msk.f32.mxu0 %vm990_vm0, %v989_v6  ;;  %v154_v4 = vld [vmem:[%s1050_s3 + $0x20] sm:$0xff]  ;;  %v157_v7 = vld [vmem:[%s1050_s3 + $0x38] sm:$0xff]  ;;  %v160_v10 = vld [vmem:[%s1050_s3 + $0x50] sm:$0xff] }
  0x18   : > { %858 = vmatpush1.bf16.msra.mxu1 %v857_v20  ;;  %v197_v8 = vld [vmem:[%s1050_s3 + $0x178] sm:$0xff]  ;;  %v200_v11 = vld [vmem:[%s1050_s3 + $0x190] sm:$0xff]  ;;  %v159_v12 = vld [vmem:[%s1050_s3 + $0x48] sm:$0xff] }
  0x19   : > { %859 = vmatprep.subr.bf16.mxu1 %v988_v3  ;;  %v163_v13 = vld [vmem:[%s1050_s3 + $0x68] sm:$0xff]  ;;  %v162_v15 = vld [vmem:[%s1050_s3 + $0x60] sm:$0xff]  ;;  %v165_v18 = vld [vmem:[%s1050_s3 + $0x78] sm:$0xff] }
  0x1a   : > { %794 = vmatmul.mubr.msk.f32.gmra.mrb[4].mxu0 %vm240_vm2, %v158_v23  ;;  %v203_v14 = vld [vmem:[%s1050_s3 + $0x1a8] sm:$0xff]  ;;  %v166_v16 = vld [vmem:[%s1050_s3 + $0x80] sm:$0xff]  ;;  %v169_v19 = vld [vmem:[%s1050_s3 + $0x98] sm:$0xff] }
  0x1b   : > { %796 = vmatprep.mubr.msk.f32.mxu0 %vm990_vm0, %v989_v6  ;;  %v206_v17 = vld [vmem:[%s1050_s3 + $0x1c0] sm:$0xff]  ;;  %v168_v20 = vld [vmem:[%s1050_s3 + $0x90] sm:$0xff]  ;;  %v171_v22 = vld [vmem:[%s1050_s3 + $0xa8] sm:$0xff] }
  0x1c   : > { %861 = vmatpush1.bf16.msra.mxu1 %v860_v24  ;;  %v172_v21 = vld [vmem:[%s1050_s3 + $0xb0] sm:$0xff]  ;;  %v174_v23 = vld [vmem:[%s1050_s3 + $0xc0] sm:$0xff]  ;;  %v177_v25 = vld [vmem:[%s1050_s3 + $0xd8] sm:$0xff] }
  0x1d   : > { %862 = vmatprep.subr.bf16.mxu1 %v988_v3  ;;  %v178_v24 = vld [vmem:[%s1050_s3 + $0xe0] sm:$0xff]  ;;  %v181_v26 = vld [vmem:[%s1050_s3 + $0xf8] sm:$0xff]  ;;  %v183_v29 = vld [vmem:[%s1050_s3 + $0x108] sm:$0xff] }
  0x1e   : > { %797 = vmatmul.mubr.msk.f32.gmra.mrb[6].mxu0 %vm240_vm2, %v161_v27  ;;  %v180_v27 = vld [vmem:[%s1050_s3 + $0xf0] sm:$0xff]  ;;  %v187_v30 = vld [vmem:[%s1050_s3 + $0x128] sm:$0xff]  ;;  %v189_v33 = vld [vmem:[%s1050_s3 + $0x138] sm:$0xff] }
  0x1f   : > { %799 = vmatprep.mubr.msk.f32.mxu0 %vm990_vm0, %v989_v6  ;;  %v193_v34 = vld [vmem:[%s1050_s3 + $0x158] sm:$0xff]  ;;  %v195_v37 = vld [vmem:[%s1050_s3 + $0x168] sm:$0xff] }
  0x20   : > { %864 = vmatpush1.bf16.msra.mxu1 %v863_v28  ;;  %v184_v28 = vld [vmem:[%s1050_s3 + $0x110] sm:$0xff]  ;;  %v199_v38 = vld [vmem:[%s1050_s3 + $0x188] sm:$0xff]  ;;  %v201_v41 = vld [vmem:[%s1050_s3 + $0x198] sm:$0xff] }
  0x21   : > { %865 = vmatprep.subr.bf16.mxu1 %v988_v3  ;;  %v205_v42 = vld [vmem:[%s1050_s3 + $0x1b8] sm:$0xff] }
  0x22   : > { %800 = vmatmul.mubr.msk.f32.gmra.mrb[8].mxu0 %vm240_vm2, %v164_v31  ;;  %v186_v31 = vld [vmem:[%s1050_s3 + $0x120] sm:$0xff] }
  0x23   : > { %802 = vmatprep.mubr.msk.f32.mxu0 %vm990_vm0, %v989_v6 }
  0x24   : > { %867 = vmatpush1.bf16.msra.mxu1 %v866_v32  ;;  %v190_v32 = vld [vmem:[%s1050_s3 + $0x140] sm:$0xff] }
  0x25   : > { %868 = vmatprep.subr.bf16.mxu1 %v988_v3 }
  0x26   : > { %803 = vmatmul.mubr.msk.f32.gmra.mrb[10].mxu0 %vm240_vm2, %v167_v35  ;;  %v192_v35 = vld [vmem:[%s1050_s3 + $0x150] sm:$0xff] }
  0x27   : > { %805 = vmatprep.mubr.msk.f32.mxu0 %vm990_vm0, %v989_v6 }
  0x28   : > { %870 = vmatpush1.bf16.msra.mxu1 %v869_v36  ;;  %v196_v36 = vld [vmem:[%s1050_s3 + $0x170] sm:$0xff] }
  0x29   : > { %871 = vmatprep.subr.bf16.mxu1 %v988_v3 }
  0x2a   : > { %806 = vmatmul.mubr.msk.f32.gmra.mrb[12].mxu0 %vm240_vm2, %v170_v39  ;;  %v198_v39 = vld [vmem:[%s1050_s3 + $0x180] sm:$0xff] }
  0x2b   : > { %808 = vmatprep.mubr.msk.f32.mxu0 %vm990_vm0, %v989_v6 }
  0x2c   : > { %873 = vmatpush1.bf16.msra.mxu1 %v872_v40  ;;  %v202_v40 = vld [vmem:[%s1050_s3 + $0x1a0] sm:$0xff] }
  0x2d   : > { %874 = vmatprep.subr.bf16.mxu1 %v988_v3 }
  0x2e   : > { %809 = vmatmul.mubr.msk.f32.gmra.mrb[14].mxu0 %vm240_vm2, %v173_v43  ;;  %v204_v43 = vld [vmem:[%s1050_s3 + $0x1b0] sm:$0xff] }
  0x2f   : > { %811 = vmatprep.mubr.msk.f32.mxu0 %vm990_vm0, %v989_v6 }
  0x30   : > { %876 = vmatpush1.bf16.msra.mxu1 %v875_v44 }
  0x31   : > { %877 = vmatprep.subr.bf16.mxu1 %v988_v3 }
  0x32   : > { %812 = vmatmul.mubr.msk.f32.gmra.mrb[16].mxu0 %vm240_vm2, %v176_v47 }
  0x33   : > { %814 = vmatprep.mubr.msk.f32.mxu0 %vm990_vm0, %v989_v6 }
  0x34   : > { %879 = vmatpush1.bf16.msra.mxu1 %v878_v48 }
  0x35   : > { %880 = vmatprep.subr.bf16.mxu1 %v988_v3 }
  0x36   : > { %815 = vmatmul.mubr.msk.f32.gmra.mrb[18].mxu0 %vm240_vm2, %v179_v51 }
  0x37   : > { %817 = vmatprep.mubr.msk.f32.mxu0 %vm990_vm0, %v989_v6 }
  0x38   : > { %882 = vmatpush1.bf16.msra.mxu1 %v881_v52 }
  0x39   : > { %883 = vmatprep.subr.bf16.mxu1 %v988_v3 }
  0x3a   : > { %818 = vmatmul.mubr.msk.f32.gmra.mrb[20].mxu0 %vm240_vm2, %v182_v55 }
  0x3b   : > { %820 = vmatprep.mubr.msk.f32.mxu0 %vm990_vm0, %v989_v6 }
  0x3c   : > { %885 = vmatpush1.bf16.msra.mxu1 %v884_v56 }
  0x3d   : > { %886 = vmatprep.subr.bf16.mxu1 %v988_v3 }
  0x3e   : > { %821 = vmatmul.mubr.msk.f32.gmra.mrb[22].mxu0 %vm240_vm2, %v185_v59 }
  0x3f   : > { %823 = vmatprep.mubr.msk.f32.mxu0 %vm990_vm0, %v989_v6 }
  0x40   : > { %888 = vmatpush1.bf16.msra.mxu1 %v887_v60 }
  0x41   : > { %889 = vmatprep.subr.bf16.mxu1 %v988_v3  ;;  %v194_v3 = vld [vmem:[%s1050_s3 + $0x160] sm:$0xff] }
  0x42   : > { %824 = vmatmul.mubr.msk.f32.gmra.mrb[24].mxu0 %vm240_vm2, %v188_v63 }
  0x43   : > { %826 = vmatprep.mubr.msk.f32.mxu0 %vm990_vm0, %v989_v6 }
  0x44   : > { %891 = vmatpush1.bf16.msra.mxu1 %v890_v0 }
  0x46   : > { %827 = vmatmul.mubr.msk.f32.gmra.mrb[26].mxu0 %vm240_vm2, %v191_v1 }
  0x47   : > { %367 = vmatmul.mubr.f32.vlgmr.msra.gmra.mrb[0].mxu1 %v150_v2  ;;  %829 = vmatprep.mubr.msk.f32.mxu0 %vm990_vm0, %v989_v6 }
  0x48   : > { %371 = vmatprep.mubr.f32.mxu1 %v154_v4 }
  0x4a   : > { %830 = vmatmul.mubr.msk.f32.gmra.mrb[28].mxu0 %vm240_vm2, %v194_v3 }
  0x4b   : > { %372 = vmatmul.mubr.f32.gmra.mrb[2].mxu1 %v153_v5  ;;  %832 = vmatprep.mubr.msk.f32.mxu0 %vm990_vm0, %v989_v6 }
  0x4c   : > { %376 = vmatprep.mubr.f32.mxu1 %v157_v7 }
  0x4e   : > { %833 = vmatmul.mubr.msk.f32.gmra.mrb[30].mxu0 %vm240_vm2, %v197_v8 }
  0x4f   : > { %377 = vmatmul.mubr.f32.gmra.mrb[4].mxu1 %v156_v9  ;;  %835 = vmatprep.mubr.msk.f32.mxu0 %vm990_vm0, %v989_v6 }
  0x50   : > { %381 = vmatprep.mubr.f32.mxu1 %v160_v10 }
  0x52   : > { %836 = vmatmul.mubr.msk.f32.gmra.mrb[32].mxu0 %vm240_vm2, %v200_v11 }
  0x53   : > { %382 = vmatmul.mubr.f32.gmra.mrb[6].mxu1 %v159_v12  ;;  %838 = vmatprep.mubr.msk.f32.mxu0 %vm990_vm0, %v989_v6 }
  0x54   : > { %386 = vmatprep.mubr.f32.mxu1 %v163_v13 }
  0x56   : > { %839 = vmatmul.mubr.msk.f32.gmra.mrb[34].mxu0 %vm240_vm2, %v203_v14 }
  0x57   : > { %387 = vmatmul.mubr.f32.gmra.mrb[8].mxu1 %v162_v15  ;;  %841 = vmatprep.mubr.msk.f32.mxu0 %vm990_vm0, %v989_v6  ;;  %v175_v6 = vld [vmem:[%s1050_s3 + $0xc8] sm:$0xff]  ;;  %s742_s3 = sshll.u32 %s1345_s17, 3 }
  0x58   : > { %391 = vmatprep.mubr.f32.mxu1 %v166_v16  ;;  %s1280_s6 = scalar_lea.vmem %s1343_s2, %s742_s3 }
  0x5a   : > { %842 = vmatmul.mubr.msk.f32.gmra.mrb[36].mxu0 %vm240_vm2, %v206_v17 }
  0x5b   : > { %392 = vmatmul.mubr.f32.gmra.mrb[10].mxu1 %v165_v18 }
  0x5c   : > { %396 = vmatprep.mubr.f32.mxu1 %v169_v19 }
  0x5f   : > { %397 = vmatmul.mubr.f32.gmra.mrb[12].mxu1 %v168_v20 }
  0x60   : > { %401 = vmatprep.mubr.f32.mxu1 %v172_v21 }
  0x63   : > { %402 = vmatmul.mubr.f32.gmra.mrb[14].mxu1 %v171_v22 }
  0x64   : > { %406 = vmatprep.mubr.f32.mxu1 %v175_v6 }
  0x67   : > { %407 = vmatmul.mubr.f32.gmra.mrb[16].mxu1 %v174_v23 }
  0x68   : > { %411 = vmatprep.mubr.f32.mxu1 %v178_v24 }
  0x6b   : > { %412 = vmatmul.mubr.f32.gmra.mrb[18].mxu1 %v177_v25 }
  0x6c   : > { %416 = vmatprep.mubr.f32.mxu1 %v181_v26 }
  0x6f   : > { %417 = vmatmul.mubr.f32.gmra.mrb[20].mxu1 %v180_v27 }
  0x70   : > { %421 = vmatprep.mubr.f32.mxu1 %v184_v28 }
  0x73   : > { %422 = vmatmul.mubr.f32.gmra.mrb[22].mxu1 %v183_v29 }
  0x74   : > { %426 = vmatprep.mubr.f32.mxu1 %v187_v30 }
  0x77   : > { %427 = vmatmul.mubr.f32.gmra.mrb[24].mxu1 %v186_v31 }
  0x78   : > { %431 = vmatprep.mubr.f32.mxu1 %v190_v32 }
  0x7b   : > { %432 = vmatmul.mubr.f32.gmra.mrb[26].mxu1 %v189_v33 }
  0x7c   : > { %436 = vmatprep.mubr.f32.mxu1 %v193_v34 }
  0x7f   : > { %437 = vmatmul.mubr.f32.gmra.mrb[28].mxu1 %v192_v35 }
  0x80   : > { %441 = vmatprep.mubr.f32.mxu1 %v196_v36 }
  0x83   : > { %442 = vmatmul.mubr.f32.gmra.mrb[30].mxu1 %v195_v37 }
  0x84   : > { %446 = vmatprep.mubr.f32.mxu1 %v199_v38 }
  0x87   : > { %447 = vmatmul.mubr.f32.gmra.mrb[32].mxu1 %v198_v39 }
  0x88   : > { %451 = vmatprep.mubr.f32.mxu1 %v202_v40 }
  0x8b   : > { %452 = vmatmul.mubr.f32.gmra.mrb[34].mxu1 %v201_v41 }
  0x8c   : > { %456 = vmatprep.mubr.f32.mxu1 %v205_v42 }
  0x8f   : > { %457 = vmatmul.mubr.f32.gmra.mrb[36].mxu1 %v204_v43 }
  0xe5   : > { %v528_v44 = vpop.f32.mrb[0].mxu0 }
  0xe6   : > { %v789_v45 = vpop.f32.mrb[1].mxu0 }
  0xe9   : > { %v533_v46 = vpop.f32.mrb[2].mxu0 }
  0xea   : > { %v792_v47 = vpop.f32.mrb[3].mxu0 }
  0xed   : > { %v538_v48 = vpop.f32.mrb[4].mxu0 }
  0xee   : > { %v795_v49 = vpop.f32.mrb[5].mxu0 }
  0xf1   : > { %v543_v50 = vpop.f32.mrb[6].mxu0 }
  0xf2   : > { %v798_v51 = vpop.f32.mrb[7].mxu0 }
  0xf5   : > { %v548_v52 = vpop.f32.mrb[8].mxu0 }
  0xf6   : > { %v801_v53 = vpop.f32.mrb[9].mxu0 }
  0xf9   : > { %v1252_v54 = vpop.f32.mrb[10].mxu0 }
  0xfa   : > { %v804_v55 = vpop.f32.mrb[11].mxu0 }
  0xfd   : > { %v1254_v56 = vpop.f32.mrb[12].mxu0 }
  0xfe   : > { %v807_v57 = vpop.f32.mrb[13].mxu0 }
 0x101   : > { %v1256_v58 = vpop.f32.mrb[14].mxu0 }
 0x102   : > { %v810_v59 = vpop.f32.mrb[15].mxu0 }
 0x105   : > { %v1258_v60 = vpop.f32.mrb[16].mxu0 }
 0x106   : > { %v813_v61 = vpop.f32.mrb[17].mxu0 }
 0x109   : > { %v1260_v62 = vpop.f32.mrb[18].mxu0 }
 0x10a   : > { %v816_v63 = vpop.f32.mrb[19].mxu0 }
 0x10d   : > { %v1262_v0 = vpop.f32.mrb[20].mxu0 }
 0x10e   : > { %v819_v1 = vpop.f32.mrb[21].mxu0 }
 0x111   : > { %v1264_v2 = vpop.f32.mrb[22].mxu0 }
 0x112   : > { %v822_v4 = vpop.f32.mrb[23].mxu0 }
 0x115   : > { %v1266_v3 = vpop.f32.mrb[24].mxu0 }
 0x116   : > { %v825_v5 = vpop.f32.mrb[25].mxu0 }
 0x119   : > { %v1268_v7 = vpop.f32.mrb[26].mxu0 }
 0x11a   : > { %v368_v8 = vpop.f32.mrb[0].mxu1  ;;  %v828_v9 = vpop.f32.mrb[27].mxu0 }
 0x11b   : > { %v369_v10 = vadd.f32 1e-12, %v368_v8  ;;  %v370_v11 = vpop.f32.mrb[1].mxu1 }
 0x11d   : > { %v529_v12 = vadd.f32 %v528_v44, %v369_v10  ;;  %v1270_v13 = vpop.f32.mrb[28].mxu0 }
 0x11e   : > { %v373_v14 = vpop.f32.mrb[2].mxu1  ;;  %v831_v15 = vpop.f32.mrb[29].mxu0 }
 0x11f   : > { %942 = vlog2.f32 %v529_v12  ;;  %v374_v16 = vadd.f32 1e-12, %v373_v14  ;;  %v375_v17 = vpop.f32.mrb[3].mxu1 }
 0x121   : > { %v534_v18 = vadd.f32 %v533_v46, %v374_v16  ;;  %v1272_v19 = vpop.f32.mrb[30].mxu0 }
 0x122   : > { %v378_v20 = vpop.f32.mrb[4].mxu1  ;;  %v834_v21 = vpop.f32.mrb[31].mxu0 }
 0x123   : > { %944 = vlog2.f32 %v534_v18  ;;  %v379_v22 = vadd.f32 1e-12, %v378_v20  ;;  %v380_v6 = vpop.f32.mrb[5].mxu1 }
 0x125   : > { %v539_v23 = vadd.f32 %v538_v48, %v379_v22  ;;  %v1274_v24 = vpop.f32.mrb[32].mxu0 }
 0x126   : > { %v383_v25 = vpop.f32.mrb[6].mxu1  ;;  %v837_v26 = vpop.f32.mrb[33].mxu0 }
 0x127   : > { %946 = vlog2.f32 %v539_v23  ;;  %v384_v27 = vadd.f32 1e-12, %v383_v25  ;;  %v385_v28 = vpop.f32.mrb[7].mxu1 }
 0x129   : > { %v943_v29 = vpop.eup %942  ;;  %v544_v30 = vadd.f32 %v543_v50, %v384_v27  ;;  %v1282_v31 = vpop.f32.mrb[34].mxu0 }
 0x12a   : > { %v623_v32 = vmul.f32 0.6931472, %v943_v29  ;;  %v388_v33 = vpop.f32.mrb[8].mxu1  ;;  %v840_v34 = vpop.f32.mrb[35].mxu0 }
 0x12b   : > { %948 = vlog2.f32 %v544_v30  ;;  %v389_v35 = vadd.f32 1e-12, %v388_v33  ;;  %v390_v36 = vpop.f32.mrb[9].mxu1 }
 0x12c   : > { %661 = vst.msk [vmem:[%s1280_s6] sm:$0xff] %vm660_vm3, %v623_v32 }
 0x12d   : > { %v945_v37 = vpop.eup %944  ;;  %v549_v38 = vadd.f32 %v548_v52, %v389_v35  ;;  %v1286_v39 = vpop.f32.mrb[36].mxu0 }
 0x12e   : > { %v625_v40 = vmul.f32 0.6931472, %v945_v37  ;;  %v393_v41 = vpop.f32.mrb[10].mxu1  ;;  %v843_v42 = vpop.f32.mrb[37].mxu0 }
 0x12f   : > { %950 = vlog2.f32 %v549_v38  ;;  %v394_v43 = vadd.f32 1e-12, %v393_v41  ;;  %v395_v44 = vpop.f32.mrb[11].mxu1 }
 0x130   : > { %662 = vst.msk [vmem:[%s1280_s6 + $0x8] sm:$0xff] %vm660_vm3, %v625_v40 }
 0x131   : > { %v947_v45 = vpop.eup %946  ;;  %v554_v46 = vadd.f32 %v1252_v54, %v394_v43 }
 0x132   : > { %v627_v47 = vmul.f32 0.6931472, %v947_v45  ;;  %v398_v48 = vpop.f32.mrb[12].mxu1 }
 0x133   : > { %952 = vlog2.f32 %v554_v46  ;;  %v399_v49 = vadd.f32 1e-12, %v398_v48  ;;  %v400_v50 = vpop.f32.mrb[13].mxu1 }
 0x134   : > { %663 = vst.msk [vmem:[%s1280_s6 + $0x10] sm:$0xff] %vm660_vm3, %v627_v47 }
 0x135   : > { %v949_v51 = vpop.eup %948  ;;  %v559_v52 = vadd.f32 %v1254_v56, %v399_v49 }
 0x136   : > { %v629_v53 = vmul.f32 0.6931472, %v949_v51  ;;  %v403_v55 = vpop.f32.mrb[14].mxu1 }
 0x137   : > { %954 = vlog2.f32 %v559_v52  ;;  %v404_v57 = vadd.f32 1e-12, %v403_v55  ;;  %v405_v59 = vpop.f32.mrb[15].mxu1 }
 0x138   : > { %664 = vst.msk [vmem:[%s1280_s6 + $0x18] sm:$0xff] %vm660_vm3, %v629_v53 }
 0x139   : > { %v951_v54 = vpop.eup %950  ;;  %v564_v61 = vadd.f32 %v1256_v58, %v404_v57 }
 0x13a   : > { %v631_v63 = vmul.f32 0.6931472, %v951_v54  ;;  %v408_v1 = vpop.f32.mrb[16].mxu1 }
 0x13b   : > { %956 = vlog2.f32 %v564_v61  ;;  %v409_v4 = vadd.f32 1e-12, %v408_v1  ;;  %v410_v5 = vpop.f32.mrb[17].mxu1 }
 0x13c   : > { %665 = vst.msk [vmem:[%s1280_s6 + $0x20] sm:$0xff] %vm660_vm3, %v631_v63 }
 0x13d   : > { %v953_v56 = vpop.eup %952  ;;  %v569_v8 = vadd.f32 %v1258_v60, %v409_v4 }
 0x13e   : > { %v633_v9 = vmul.f32 0.6931472, %v953_v56  ;;  %v413_v10 = vpop.f32.mrb[18].mxu1 }
 0x13f   : > { %958 = vlog2.f32 %v569_v8  ;;  %v414_v11 = vadd.f32 1e-12, %v413_v10  ;;  %v415_v12 = vpop.f32.mrb[19].mxu1 }
 0x140   : > { %666 = vst.msk [vmem:[%s1280_s6 + $0x28] sm:$0xff] %vm660_vm3, %v633_v9 }
 0x141   : > { %v955_v58 = vpop.eup %954  ;;  %v574_v14 = vadd.f32 %v1260_v62, %v414_v11 }
 0x142   : > { %v635_v15 = vmul.f32 0.6931472, %v955_v58  ;;  %v418_v16 = vpop.f32.mrb[20].mxu1 }
 0x143   : > { %960 = vlog2.f32 %v574_v14  ;;  %v419_v17 = vadd.f32 1e-12, %v418_v16  ;;  %v420_v18 = vpop.f32.mrb[21].mxu1 }
 0x144   : > { %667 = vst.msk [vmem:[%s1280_s6 + $0x30] sm:$0xff] %vm660_vm3, %v635_v15 }
 0x145   : > { %v957_v60 = vpop.eup %956  ;;  %v579_v20 = vadd.f32 %v1262_v0, %v419_v17 }
 0x146   : > { %v637_v21 = vmul.f32 0.6931472, %v957_v60  ;;  %v423_v22 = vpop.f32.mrb[22].mxu1 }
 0x147   : > { %962 = vlog2.f32 %v579_v20  ;;  %v424_v6 = vadd.f32 1e-12, %v423_v22  ;;  %v425_v23 = vpop.f32.mrb[23].mxu1 }
 0x148   : > { %668 = vst.msk [vmem:[%s1280_s6 + $0x38] sm:$0xff] %vm660_vm3, %v637_v21 }
 0x149   : > { %v959_v62 = vpop.eup %958  ;;  %v584_v25 = vadd.f32 %v1264_v2, %v424_v6 }
 0x14a   : > { %v639_v26 = vmul.f32 0.6931472, %v959_v62  ;;  %v428_v27 = vpop.f32.mrb[24].mxu1 }
 0x14b   : > { %964 = vlog2.f32 %v584_v25  ;;  %v429_v28 = vadd.f32 1e-12, %v428_v27  ;;  %v430_v29 = vpop.f32.mrb[25].mxu1 }
 0x14c   : > { %669 = vst.msk [vmem:[%s1280_s6 + $0x40] sm:$0xff] %vm660_vm3, %v639_v26 }
 0x14d   : > { %v961_v0 = vpop.eup %960  ;;  %v589_v30 = vadd.f32 %v1266_v3, %v429_v28 }
 0x14e   : > { %v641_v32 = vmul.f32 0.6931472, %v961_v0  ;;  %v433_v33 = vpop.f32.mrb[26].mxu1 }
 0x14f   : > { %966 = vlog2.f32 %v589_v30  ;;  %v434_v34 = vadd.f32 1e-12, %v433_v33  ;;  %v435_v35 = vpop.f32.mrb[27].mxu1 }
 0x150   : > { %670 = vst.msk [vmem:[%s1280_s6 + $0x48] sm:$0xff] %vm660_vm3, %v641_v32 }
 0x151   : > { %v963_v2 = vpop.eup %962  ;;  %v594_v36 = vadd.f32 %v1268_v7, %v434_v34 }
 0x152   : > { %v643_v37 = vmul.f32 0.6931472, %v963_v2  ;;  %v438_v38 = vpop.f32.mrb[28].mxu1 }
 0x153   : > { %968 = vlog2.f32 %v594_v36  ;;  %v439_v40 = vadd.f32 1e-12, %v438_v38  ;;  %v440_v41 = vpop.f32.mrb[29].mxu1 }
 0x154   : > { %671 = vst.msk [vmem:[%s1280_s6 + $0x50] sm:$0xff] %vm660_vm3, %v643_v37 }
 0x155   : > { %v965_v3 = vpop.eup %964  ;;  %v599_v42 = vadd.f32 %v1270_v13, %v439_v40 }
 0x156   : > { %v645_v43 = vmul.f32 0.6931472, %v965_v3  ;;  %v443_v44 = vpop.f32.mrb[30].mxu1 }
 0x157   : > { %970 = vlog2.f32 %v599_v42  ;;  %v444_v45 = vadd.f32 1e-12, %v443_v44  ;;  %v445_v46 = vpop.f32.mrb[31].mxu1 }
 0x158   : > { %672 = vst.msk [vmem:[%s1280_s6 + $0x58] sm:$0xff] %vm660_vm3, %v645_v43 }
 0x159   : > { %v967_v7 = vpop.eup %966  ;;  %v604_v47 = vadd.f32 %v1272_v19, %v444_v45 }
 0x15a   : > { %v647_v48 = vmul.f32 0.6931472, %v967_v7  ;;  %v448_v49 = vpop.f32.mrb[32].mxu1 }
 0x15b   : > { %972 = vlog2.f32 %v604_v47  ;;  %v449_v50 = vadd.f32 1e-12, %v448_v49  ;;  %v450_v51 = vpop.f32.mrb[33].mxu1 }
 0x15c   : > { %673 = vst.msk [vmem:[%s1280_s6 + $0x60] sm:$0xff] %vm660_vm3, %v647_v48 }
 0x15d   : > { %v969_v13 = vpop.eup %968  ;;  %v609_v52 = vadd.f32 %v1274_v24, %v449_v50 }
 0x15e   : > { %v649_v53 = vmul.f32 0.6931472, %v969_v13  ;;  %v453_v55 = vpop.f32.mrb[34].mxu1 }
 0x15f   : > { %974 = vlog2.f32 %v609_v52  ;;  %v454_v57 = vadd.f32 1e-12, %v453_v55  ;;  %v455_v59 = vpop.f32.mrb[35].mxu1 }
 0x160   : > { %674 = vst.msk [vmem:[%s1280_s6 + $0x68] sm:$0xff] %vm660_vm3, %v649_v53 }
 0x161   : > { %v971_v19 = vpop.eup %970  ;;  %v614_v54 = vadd.f32 %v1282_v31, %v454_v57 }
 0x162   : > { %v651_v61 = vmul.f32 0.6931472, %v971_v19  ;;  %v458_v63 = vpop.f32.mrb[36].mxu1 }
 0x163   : > { %976 = vlog2.f32 %v614_v54  ;;  %v459_v1 = vadd.f32 1e-12, %v458_v63  ;;  %v460_v4 = vpop.f32.mrb[37].mxu1 }
 0x164   : > { %675 = vst.msk [vmem:[%s1280_s6 + $0x70] sm:$0xff] %vm660_vm3, %v651_v61 }
 0x165   : > { %v973_v24 = vpop.eup %972  ;;  %v619_v5 = vadd.f32 %v1286_v39, %v459_v1 }
 0x166   : > { %v653_v56 = vmul.f32 0.6931472, %v973_v24 }
 0x167   : > { %978 = vlog2.f32 %v619_v5 }
 0x168   : > { %676 = vst.msk [vmem:[%s1280_s6 + $0x78] sm:$0xff] %vm660_vm3, %v653_v56 }
 0x169   : > { %v975_v8 = vpop.eup %974 }
 0x16a   : > { %v655_v9 = vmul.f32 0.6931472, %v975_v8 }
 0x16c   : > { %677 = vst.msk [vmem:[%s1280_s6 + $0x80] sm:$0xff] %vm660_vm3, %v655_v9 }
 0x16d   : > { %v977_v31 = vpop.eup %976 }
 0x16e   : > { %v657_v10 = vmul.f32 0.6931472, %v977_v31 }
 0x170   : > { %678 = vst.msk [vmem:[%s1280_s6 + $0x88] sm:$0xff] %vm660_vm3, %v657_v10 }
 0x171   : > { %v979_v11 = vpop.eup %978 }
 0x172   : > { %v659_v12 = vmul.f32 0.6931472, %v979_v11 }
 0x174   : > { %679 = vst.msk [vmem:[%s1280_s6 + $0x90] sm:$0xff] %vm660_vm3, %v659_v12 }
 0x175 PF: > { %s12_s9 = sadd.s32 1, %s986_s9  }
 0x176   : > { %p9_p4 = scmp.ge.s32.totalorder %s12_s9, 4  }
 0x178   :  { %11 = sbr.rel (!%p9_p4) target bundleno = 1 (0x1), region = 58 }

</bundles_post_ra>
